<compile_context>
chip_gen: v7x
topology: tpu7x:2x2x1
jax: 0.10.0
libtpu: 0.0.40
codegen_flags: <defaults>
</compile_context>

<pallas_src>
import math
import jax
import jax.numpy as jnp
from jax.experimental import pallas as pl
from jax.experimental.pallas import tpu as pltpu

SQRT2 = math.sqrt(2.0)
TILE_M = 256           # batch tile; review: 256 is enough on v6e/v7x (512 on v5e)
LANES = 128


def _round_up(n, m):
    return ((n + m - 1) // m) * m


# ----------------------------------------------------------------------------
# Kernels
# ----------------------------------------------------------------------------
def _fcn_stream_kernel(x_ref, w_in_ref, w_hid_ref, w_out_ref, o_ref, h_ref):
    """Grid = (batch_tiles, num_hidden). One hidden layer's weights per step.

    Step l == 0      : h = relu(x @ w_in)          (sqrt2 folded into w_in)
    every step l     : h = relu(h @ w_hid[l])      (sqrt2 folded into w_hid)
    step l == last   : o = h @ w_out               (w_out zero-padded to 128 lanes)
    """
    l = pl.program_id(1)

    @pl.when(l == 0)
    def _():
        h0 = jnp.dot(x_ref[...], w_in_ref[...],
                     preferred_element_type=jnp.float32)
        h_ref[...] = jnp.maximum(h0, 0.0).astype(h_ref.dtype)

    h = jnp.dot(h_ref[...], w_hid_ref[0],
                preferred_element_type=jnp.float32)
    h_ref[...] = jnp.maximum(h, 0.0).astype(h_ref.dtype)

    @pl.when(l == pl.num_programs(1) - 1)
    def _():
        o_ref[...] = jnp.dot(h_ref[...], w_out_ref[...],
                             preferred_element_type=jnp.float32
                             ).astype(o_ref.dtype)


def _fcn_nohidden_kernel(x_ref, w_in_ref, w_out_ref, o_ref):
    """depth == 2: only the input and output layers, single batch-tile grid."""
    h = jnp.maximum(
        jnp.dot(x_ref[...], w_in_ref[...], preferred_element_type=jnp.float32),
        0.0).astype(w_out_ref.dtype)
    o_ref[...] = jnp.dot(h, w_out_ref[...],
                         preferred_element_type=jnp.float32).astype(o_ref.dtype)


# ----------------------------------------------------------------------------
# Wrapper
# ----------------------------------------------------------------------------
def fcn_forward(kparams, x):
    """x: any shape (N, ...) — flattened to (N, input_dim) like x.view(N, -1)."""
    w_in, w_hid, w_out = kparams["w_in"], kparams["w_hid"], kparams["w_out"]
    output_dim = kparams["output_dim"]
    input_dim, width = w_in.shape
    out_pad = w_out.shape[1]
    L = 0 if w_hid is None else w_hid.shape[0]

    N = x.shape[0]
    x2 = x.reshape(N, -1).astype(jnp.bfloat16)
    assert x2.shape[1] == input_dim

    # Fixed batch tiles + zero padding: keeps per-tile VMEM bounded and keeps
    # the "parallel" axis populated for megacore when the batch is large.
    if N >= TILE_M:
        tile_m = TILE_M
        m_pad = pl.cdiv(N, TILE_M) * TILE_M
    else:
        tile_m = m_pad = max(8, _round_up(N, 8))
    if m_pad != N:
        x2 = jnp.pad(x2, ((0, m_pad - N), (0, 0)))
    n_tiles = m_pad // tile_m

    flops = 2 * m_pad * (input_dim * width + L * width * width + width * out_pad)
    bytes_accessed = (x2.size * 2 + w_in.size * 2 + w_out.size * 2
                      + (0 if w_hid is None else w_hid.size * 2)
                      + m_pad * out_pad * 4)
    cost = pl.CostEstimate(flops=flops, transcendentals=0,
                           bytes_accessed=bytes_accessed)

    if L > 0:
        out = pl.pallas_call(
            _fcn_stream_kernel,
            out_shape=jax.ShapeDtypeStruct((m_pad, out_pad), jnp.float32),
            grid=(n_tiles, L),
            in_specs=[
                pl.BlockSpec((tile_m, input_dim), lambda i, l: (i, 0)),   # x tile
                pl.BlockSpec((input_dim, width), lambda i, l: (0, 0)),    # w_in
                pl.BlockSpec((1, width, width), lambda i, l: (l, 0, 0)),  # streamed
                pl.BlockSpec((width, out_pad), lambda i, l: (0, 0)),      # w_out
            ],
            out_specs=pl.BlockSpec((tile_m, out_pad), lambda i, l: (i, 0)),
            scratch_shapes=[pltpu.VMEM((tile_m, width), jnp.bfloat16)],
            compiler_params=pltpu.CompilerParams(
                dimension_semantics=("parallel", "arbitrary")),
            cost_estimate=cost,
        )(x2, w_in, w_hid, w_out)
    else:
        out = pl.pallas_call(
            _fcn_nohidden_kernel,
            out_shape=jax.ShapeDtypeStruct((m_pad, out_pad), jnp.float32),
            grid=(n_tiles,),
            in_specs=[
                pl.BlockSpec((tile_m, input_dim), lambda i: (i, 0)),
                pl.BlockSpec((input_dim, width), lambda i: (0, 0)),
                pl.BlockSpec((width, out_pad), lambda i: (0, 0)),
            ],
            out_specs=pl.BlockSpec((tile_m, out_pad), lambda i: (i, 0)),
            compiler_params=pltpu.CompilerParams(
                dimension_semantics=("parallel",)),
            cost_estimate=cost,
        )(x2, w_in, w_out)

    return out[:N, :output_dim]


# ----------------------------------------------------------------------------
# Parameters
# ----------------------------------------------------------------------------
def make_params(key, depth, width, input_dim, output_dim):
    """Logical (nn.Linear-equivalent) weights, stored pre-transposed (in, out)."""
    assert depth >= 2, "FCN needs at least input + output layers"
    n_hidden = depth - 2
    keys = jax.random.split(key, n_hidden + 2)

    def lin(k, fan_in, fan_out):
        bound = 1.0 / math.sqrt(fan_in)   # matches nn.Linear default range
        return jax.random.uniform(k, (fan_in, fan_out), jnp.float32,
                                  -bound, bound)

    w_in = lin(keys[0], input_dim, width)
    w_hid = (jnp.stack([lin(keys[1 + i], width, width)
                        for i in range(n_hidden)], axis=0)
             if n_hidden > 0 else None)
    w_out = lin(keys[-1], width, output_dim)
    return {"w_in": w_in, "w_hid": w_hid, "w_out": w_out}


def prepare_kernel_params(params):
    """One-time (hoisted) conversion to kernel layout:
       * sqrt(2) folded into w_in / w_hid (relu(h)*sqrt2 == relu(h*sqrt2)),
       * bf16 weights (MXU-native, half the HBM/VMEM traffic),
       * w_out zero-padded to a multiple of 128 output features (lane-dense)."""
    w_in = (params["w_in"] * SQRT2).astype(jnp.bfloat16)
    w_hid = (None if params["w_hid"] is None
             else (params["w_hid"] * SQRT2).astype(jnp.bfloat16))
    w_out = params["w_out"]
    output_dim = w_out.shape[1]
    out_pad = _round_up(output_dim, LANES)
    w_out_p = jnp.pad(w_out, ((0, 0), (0, out_pad - output_dim))
                      ).astype(jnp.bfloat16)
    return {"w_in": w_in, "w_hid": w_hid, "w_out": w_out_p,
            "output_dim": output_dim}


# Pure-JAX reference on the SAME (prepared, bf16) weights, f32/HIGHEST math.
# Structurally identical to the PyTorch forward: view -> initial -> relu*sqrt2
# (here folded into the weights) -> hidden layers -> final.
def fcn_ref(kparams, x):
    hp = jax.lax.Precision.HIGHEST
    h = x.reshape(x.shape[0], -1).astype(jnp.float32)
    h = jnp.maximum(jnp.dot(h, kparams["w_in"].astype(jnp.float32),
                            precision=hp), 0.0)
    if kparams["w_hid"] is not None:
        for l in range(kparams["w_hid"].shape[0]):
            h = jnp.maximum(jnp.dot(h, kparams["w_hid"][l].astype(jnp.float32),
                                    precision=hp), 0.0)
    out = jnp.dot(h, kparams["w_out"].astype(jnp.float32), precision=hp)
    return out[:, :kparams["output_dim"]]


# ----------------------------------------------------------------------------
if __name__ == "__main__":
    key = jax.random.PRNGKey(0)
    k_param, k_x = jax.random.split(key)

    # Small shapes consistent with the module: x.view(N, -1) -> input_dim.
    batch, C, H, W = 2, 4, 16, 16
    depth, width, output_dim = 4, 256, 10
    input_dim = C * H * W                      # 1024

    x = jax.random.normal(k_x, (batch, C, H, W), jnp.float32)
    params = make_params(k_param, depth, width, input_dim, output_dim)
    kparams = prepare_kernel_params(params)    # hoisted out of the forward pass

    logits = fcn_forward(kparams, x)
    jax.block_until_ready(logits)
    assert logits.shape == (batch, output_dim)

    ref = fcn_ref(kparams, x)
    max_err = float(jnp.max(jnp.abs(logits - ref)))
    assert jnp.allclose(logits, ref, rtol=1e-2, atol=1e-2), max_err

    print("KERNEL_OK")
</pallas_src>

<mosaic_0001>
module attributes {stable_mosaic.version = 11 : i64} {
  func.func @_fcn_stream_kernel(%arg0: i32, %arg1: i32, %arg2: memref<8x1024xbf16, #tpu.memory_space<vmem>>, %arg3: memref<1024x256xbf16, #tpu.memory_space<vmem>>, %arg4: memref<1x256x256xbf16, #tpu.memory_space<vmem>>, %arg5: memref<256x128xbf16, #tpu.memory_space<vmem>>, %arg6: memref<8x128xf32, #tpu.memory_space<vmem>>, %arg7: memref<8x256xbf16, #tpu.memory_space<vmem>>) attributes {dimension_semantics = [#tpu.dimension_semantics<parallel>, #tpu.dimension_semantics<arbitrary>], iteration_bounds = array<i64: 1, 2>, scalar_prefetch = 0 : i64, scratch_operands = 1 : i64, tpu.core_type = #tpu.core_type<tc>, window_params = [{transform_indices = @transform_0, window_bounds = array<i64: 8, 1024>}, {pipeline_mode = #tpu.pipeline_mode<synchronous>, transform_indices = @transform_1, window_bounds = array<i64: 1024, 256>}, {transform_indices = @transform_2, window_bounds = array<i64: 1, 256, 256>}, {pipeline_mode = #tpu.pipeline_mode<synchronous>, transform_indices = @transform_3, window_bounds = array<i64: 256, 128>}, {transform_indices = @transform_4, window_bounds = array<i64: 8, 128>}]} {
    %c0_i32 = arith.constant 0 : i32
    %0 = arith.cmpi eq, %arg1, %c0_i32 : i32
    %1 = arith.extui %0 : i1 to i32
    %c0_i32_0 = arith.constant 0 : i32
    %2 = arith.cmpi ne, %1, %c0_i32_0 : i32
    scf.if %2 {
      %c0_9 = arith.constant 0 : index
      %c0_10 = arith.constant 0 : index
      %14 = vector.load %arg2[%c0_9, %c0_10] : memref<8x1024xbf16, #tpu.memory_space<vmem>>, vector<8x1024xbf16>
      %c0_11 = arith.constant 0 : index
      %c0_12 = arith.constant 0 : index
      %15 = vector.load %arg3[%c0_11, %c0_12] : memref<1024x256xbf16, #tpu.memory_space<vmem>>, vector<1024x256xbf16>
      %cst_13 = arith.constant dense<0.000000e+00> : vector<8x256xf32>
      %16 = tpu.matmul %14, %15, %cst_13 {dimension_numbers = #tpu.dot_dimension_numbers<[1], [0], [0], [1], [0, 0, 1, 1], [], []>} : vector<8x1024xbf16>, vector<1024x256xbf16>, vector<8x256xf32> -> vector<8x256xf32>
      %cst_14 = arith.constant 0.000000e+00 : f32
      %17 = vector.broadcast %cst_14 : f32 to vector<8x256xf32>
      %18 = arith.maximumf %16, %17 : vector<8x256xf32>
      %19 = arith.truncf %18 : vector<8x256xf32> to vector<8x256xbf16>
      %c0_15 = arith.constant 0 : index
      %c0_16 = arith.constant 0 : index
      %20 = vector.load %arg7[%c0_15, %c0_16] : memref<8x256xbf16, #tpu.memory_space<vmem>>, vector<8x256xbf16>
      tpu.vector_store %arg7[%c0_15, %c0_16], %19 {strides = array<i32>} : memref<8x256xbf16, #tpu.memory_space<vmem>>, vector<8x256xbf16>,
    } else {
    }
    %c0 = arith.constant 0 : index
    %c0_1 = arith.constant 0 : index
    %3 = vector.load %arg7[%c0, %c0_1] : memref<8x256xbf16, #tpu.memory_space<vmem>>, vector<8x256xbf16>
    %c0_2 = arith.constant 0 : index
    %c0_3 = arith.constant 0 : index
    %c0_4 = arith.constant 0 : index
    %4 = vector.load %arg4[%c0_2, %c0_3, %c0_4] : memref<1x256x256xbf16, #tpu.memory_space<vmem>>, vector<1x256x256xbf16>
    %5 = vector.shape_cast %4 : vector<1x256x256xbf16> to vector<256x256xbf16>
    %cst = arith.constant dense<0.000000e+00> : vector<8x256xf32>
    %6 = tpu.matmul %3, %5, %cst {dimension_numbers = #tpu.dot_dimension_numbers<[1], [0], [0], [1], [0, 0, 1, 1], [], []>} : vector<8x256xbf16>, vector<256x256xbf16>, vector<8x256xf32> -> vector<8x256xf32>
    %cst_5 = arith.constant 0.000000e+00 : f32
    %7 = vector.broadcast %cst_5 : f32 to vector<8x256xf32>
    %8 = arith.maximumf %6, %7 : vector<8x256xf32>
    %9 = arith.truncf %8 : vector<8x256xf32> to vector<8x256xbf16>
    %c0_6 = arith.constant 0 : index
    %c0_7 = arith.constant 0 : index
    %10 = vector.load %arg7[%c0_6, %c0_7] : memref<8x256xbf16, #tpu.memory_space<vmem>>, vector<8x256xbf16>
    tpu.vector_store %arg7[%c0_6, %c0_7], %9 {strides = array<i32>} : memref<8x256xbf16, #tpu.memory_space<vmem>>, vector<8x256xbf16>,
    %c1_i32 = arith.constant 1 : i32
    %11 = arith.cmpi eq, %arg1, %c1_i32 : i32
    %12 = arith.extui %11 : i1 to i32
    %c0_i32_8 = arith.constant 0 : i32
    %13 = arith.cmpi ne, %12, %c0_i32_8 : i32
    scf.if %13 {
      %c0_9 = arith.constant 0 : index
      %c0_10 = arith.constant 0 : index
      %14 = vector.load %arg7[%c0_9, %c0_10] : memref<8x256xbf16, #tpu.memory_space<vmem>>, vector<8x256xbf16>
      %c0_11 = arith.constant 0 : index
      %c0_12 = arith.constant 0 : index
      %15 = vector.load %arg5[%c0_11, %c0_12] : memref<256x128xbf16, #tpu.memory_space<vmem>>, vector<256x128xbf16>
      %cst_13 = arith.constant dense<0.000000e+00> : vector<8x128xf32>
      %16 = tpu.matmul %14, %15, %cst_13 {dimension_numbers = #tpu.dot_dimension_numbers<[1], [0], [0], [1], [0, 0, 1, 1], [], []>} : vector<8x256xbf16>, vector<256x128xbf16>, vector<8x128xf32> -> vector<8x128xf32>
      %c0_14 = arith.constant 0 : index
      %c0_15 = arith.constant 0 : index
      %17 = vector.load %arg6[%c0_14, %c0_15] : memref<8x128xf32, #tpu.memory_space<vmem>>, vector<8x128xf32>
      tpu.vector_store %arg6[%c0_14, %c0_15], %16 {strides = array<i32>} : memref<8x128xf32, #tpu.memory_space<vmem>>, vector<8x128xf32>,
    } else {
    }
    return
  }
  func.func @transform_0(%arg0: i32, %arg1: i32) -> (i32, i32) {
    %c0_i32 = arith.constant 0 : i32
    %c0_i32_0 = arith.constant 0 : i32
    return %arg0, %c0_i32 : i32, i32
  }
  func.func @transform_1(%arg0: i32, %arg1: i32) -> (i32, i32) {
    %c0_i32 = arith.constant 0 : i32
    %c0_i32_0 = arith.constant 0 : i32
    %c0_i32_1 = arith.constant 0 : i32
    return %c0_i32, %c0_i32_0 : i32, i32
  }
  func.func @transform_2(%arg0: i32, %arg1: i32) -> (i32, i32, i32) {
    %c0_i32 = arith.constant 0 : i32
    %c0_i32_0 = arith.constant 0 : i32
    %c0_i32_1 = arith.constant 0 : i32
    return %arg1, %c0_i32, %c0_i32_0 : i32, i32, i32
  }
  func.func @transform_3(%arg0: i32, %arg1: i32) -> (i32, i32) {
    %c0_i32 = arith.constant 0 : i32
    %c0_i32_0 = arith.constant 0 : i32
    %c0_i32_1 = arith.constant 0 : i32
    return %c0_i32, %c0_i32_0 : i32, i32
  }
  func.func @transform_4(%arg0: i32, %arg1: i32) -> (i32, i32) {
    %c0_i32 = arith.constant 0 : i32
    %c0_i32_0 = arith.constant 0 : i32
    return %arg0, %c0_i32 : i32, i32
  }
}

</mosaic_0001>

<bundles_post_ra>
// kernel: tpu_custom_call.1
= control target key start
LH: loop header
LB: loop body
LE: loop exit
PB: predicated region body
PF: predicated region fallthrough
CT: control target
= control target key end

     0   :  { %9 = vsyncpa [#allocation4], 0  ;;  %s2923_s0 = inlined_call_operand.hbm [shape: bf16[8,1024], index: 0, kind: input, shape index: {}]   ;;  %s2924_s1 = inlined_call_operand.hbm [shape: bf16[1024,256], index: 1, kind: input, shape index: {}]   ;;  %s2925_s2 = inlined_call_operand.hbm [shape: bf16[2,256,256], index: 2, kind: input, shape index: {}]   ;;  %s2926_s3 = inlined_call_operand.hbm [shape: bf16[256,128], index: 3, kind: input, shape index: {}]   ;;  %s2927_s4 = inlined_call_operand.hbm [shape: f32[8,128], index: 4, kind: output, shape index: {}]  }
   0x1   :  { %10 = vsyncpa [#allocation7], 0 }
   0x2   :  { %11 = vsyncpa [#allocation5], 0  ;;  %s2633_s15 = smov 0   ;;  %s2635_s16 = smov 0  }
   0x3   :  { %s2637_s17 = smov 0   ;;  %s2639_s18 = smov 0  }
   0x4   :  { %s2641_s19 = smov 0   ;;  %s2643_s20 = smov 0  }
   0x5 LB: > { %s2662_s21 = sadd.s32 4294967295, %s2597_s20   ;;  %p90_p0 = scmp.ne.s32.totalorder %s2585_s17, %s2581_s16  ;;  %s2597_s20 = sphi %s2643_s20, %s17_s20   ;;  %s2593_s19 = sphi %s2641_s19, %s2951_s19   ;;  %s2589_s18 = sphi %s2639_s18, %s2950_s18   ;;  %s2585_s17 = sphi %s2637_s17, %s2949_s17   ;;  %s2581_s16 = sphi %s2635_s16, %s2948_s16   ;;  %s2577_s15 = sphi %s2633_s15, %s2947_s15  }
   0x6   : > { %p91_p1 = scmp.eq.s32.totalorder %s2597_s20, 0  ;;  %p96_p2 = scmp.ne.s32.totalorder %s2581_s16, %s2577_s15 }
   0x7   : > { %p2928_p3 = scmp.eq.s32.totalorder %s2662_s21, 0  ;;  %p1782_p4 = scmp.ge.s32.totalorder %s2597_s20, 1 }
   0x8   : > { %p92_p5 = por %p91_p1, %p90_p0  ;;  %p154_p6 = scmp.lt.s32.totalorder %s2597_s20, 3 }
   0x9   : > { %p2673_p7 = por %p2928_p3, %p96_p2  ;;  %s2599_s24 = smov [#allocation3]  }
   0xa   : > { %p2677_p8 = pnand %p1782_p4, %p154_p6  ;;  %s170_s25 = sshll.u32 %s2599_s24, 4  ;;  %s171_s25 = int_to_ptr.vmem [resolvable:$true] %s170_s25 }
   0xb   : > { %s2932_s22 = scalar_select %p2673_p7, 1, 0 }
   0xc   : > { %s2933_s23 = scalar_select %p2677_p8, 1, 0 }
   0xd   : > { %p2044_p9 = pneg %p2677_p8  ;;  %p2061_p10 = scmp.lt.s32.totalorder %s2597_s20, 2 }
   0xe   : > { %s2600_s27 = smov [#allocation6]   ;;  %s2391_s6 = scalar_lea.hbm %s2923_s0, 512 }
   0xf   : > { %p2686_p11 = pnand %p2044_p9, %p2928_p3  ;;  %s180_s28 = sshll.u32 %s2600_s27, 4  ;;  %s2694_s28 = int_to_ptr.vmem [resolvable:$true] %s180_s28 }
  0x10   : > { %p2690_p12 = pnand %p2061_p10, %p92_p5  ;;  %p2392_p13 = scmp.ne.s32.totalorder %s2923_s0, %s2391_s6 }
  0x11   : > { %p2704_p0 = pneg %p2686_p11  ;;  %p2398_p4 = scmp.lt.u32.totalorder %s2391_s6, %s2923_s0 }
  0x12   : > { %s2935_s29 = scalar_select %p2690_p12, 1, 0 }
  0x13   : > { %p2394_p1 = pnand %p2704_p0, %p2392_p13 }
  0x15   : > { %p2395_p2 = pneg %p2394_p1 }
  0x17   : > { %p2400_p5 = pnand %p2398_p4, %p2395_p2 }
  0x19   : > { %2403 = shalt.err (!%p2400_p5)
}
  0x1a   : > { %s2404_s12 = scalar_lea.vmem %s171_s25, 512  ;;  %p2412_p3 = scmp.lt.s32.totalorder %s171_s25, %s171_s25 }
  0x1b   : > { %p2405_p6 = scmp.ne.s32.totalorder %s171_s25, %s2404_s12  ;;  %p2413_p7 = scmp.lt.s32.totalorder %s2404_s12, %s2404_s12 }
  0x1d   : > { %p2407_p9 = pnand %p2405_p6, %p2704_p0  ;;  %p2414_p8 = por %p2413_p7, %p2412_p3 }
  0x1f   : > { %p2408_p10 = pneg %p2407_p9 }
  0x21   : > { %p2415_p12 = pnand %p2414_p8, %p2408_p10 }
  0x23   : > { %2418 = shalt.err (!%p2415_p12)
}
  0x24   : > { %2047 = dma.hbm_to_vmem [thread:$0]  (!%p2686_p11), %s2923_s0, 512, %s171_s25, [#allocation4]  }
  0x25   : > { %s2419_s27 = scalar_lea.hbm %s2924_s1, 16384 }
  0x26   : > { %p2420_p13 = scmp.ne.s32.totalorder %s2924_s1, %s2419_s27  ;;  %p2426_p7 = scmp.lt.u32.totalorder %s2419_s27, %s2924_s1 }
  0x28   : > { %p2422_p1 = pnand %p2420_p13, %p2704_p0 }
  0x2a   : > { %p2423_p3 = pneg %p2422_p1 }
  0x2c   : > { %p2428_p8 = pnand %p2426_p7, %p2423_p3 }
  0x2e   : > { %2431 = shalt.err (!%p2428_p8)
}
  0x2f   : > { %s2432_s25 = scalar_lea.vmem %s2694_s28, 16384  ;;  %p2440_p5 = scmp.lt.s32.totalorder %s2694_s28, %s2694_s28 }
  0x30   : > { %p2433_p12 = scmp.ne.s32.totalorder %s2694_s28, %s2432_s25  ;;  %p2441_p6 = scmp.lt.s32.totalorder %s2432_s25, %s2432_s25 }
  0x32   : > { %p2435_p2 = pnand %p2433_p12, %p2704_p0  ;;  %p2442_p9 = por %p2441_p6, %p2440_p5 }
  0x34   : > { %p2436_p4 = pneg %p2435_p2 }
  0x36   : > { %p2443_p10 = pnand %p2442_p9, %p2436_p4 }
  0x38   : > { %2446 = shalt.err (!%p2443_p10)
}
  0x39   : > { %s2601_s8 = smov 128   ;;  %s2602_s10 = smov 8  }
  0x3a   : > { %2050 = dma.hbm_to_vmem [thread:$0]  (!%p2686_p11), %s2924_s1, 16384, %s2694_s28, [#allocation7], %s2601_s8, %s2601_s8, %s2602_s10  }
  0x3b   : > { %s2603_s13 = smov [#allocation9]   ;;  %s2447_s27 = scalar_lea.hbm %s2926_s3, 2048 }
  0x3c   : > { %s193_s14 = sshll.u32 %s2603_s13, 4  ;;  %p2448_p13 = scmp.ne.s32.totalorder %s2926_s3, %s2447_s27  ;;  %s194_s14 = int_to_ptr.vmem [resolvable:$true] %s193_s14 }
  0x3d   : > { %p2454_p7 = scmp.lt.u32.totalorder %s2447_s27, %s2926_s3 }
  0x3e   : > { %p2450_p1 = pnand %p2448_p13, %p2704_p0 }
  0x40   : > { %p2451_p3 = pneg %p2450_p1 }
  0x42   : > { %p2456_p8 = pnand %p2454_p7, %p2451_p3 }
  0x44   : > { %2459 = shalt.err (!%p2456_p8)
}
  0x45   : > { %s2460_s28 = scalar_lea.vmem %s194_s14, 2048  ;;  %p2468_p5 = scmp.lt.s32.totalorder %s194_s14, %s194_s14 }
  0x46   : > { %p2461_p12 = scmp.ne.s32.totalorder %s194_s14, %s2460_s28  ;;  %p2469_p6 = scmp.lt.s32.totalorder %s2460_s28, %s2460_s28 }
  0x48   : > { %p2463_p2 = pnand %p2461_p12, %p2704_p0  ;;  %p2470_p9 = por %p2469_p6, %p2468_p5 }
  0x4a   : > { %p2464_p4 = pneg %p2463_p2 }
  0x4c   : > { %p2471_p10 = pnand %p2470_p9, %p2464_p4 }
  0x4e   : > { %2474 = shalt.err (!%p2471_p10)
}
  0x4f   : > { %s2604_s25 = smov 64   ;;  %s2605_s11 = smov 4  }
  0x50   : > { %2053 = dma.hbm_to_vmem [thread:$0]  (!%p2686_p11), %s2926_s3, 2048, %s194_s14, [#allocation7], %s2604_s25, %s2604_s25, %s2605_s11  }
  0x51   : > { %s83_s9 = sadd.s32 1, %s2585_s17  ;;  %s26_s15 = sadd.s32 1, %s2593_s19 }
  0x52   : > { %s207_s24 = sand.u32 1, %s2597_s20   ;;  %p27_p0 = scmp.ge.s32.totalorder %s26_s15, 2 }
  0x53   : > { %s209_s27 = sand.u32 1, %s2585_s17   ;;  %s1991_s30 = sshll.u32 %s2593_s19, 12 }
  0x54   : > { %s2953_s15 = smov (%p27_p0, %s26_s15), 0  ;;  %s1787_s5 = sshll.u32 %s209_s27, 8 }
  0x55   : > { %s2774_s26 = scalar_lea.hbm %s2925_s2, %s1991_s30  ;;  %s80_s14 = ssub.s32 %s2593_s19, %s2953_s15 }
  0x56   : > { %p81_p11 = scmp.eq.s32.totalorder %s80_s14, 0  ;;  %s211_s28 = scalar_lea.vmem [#allocation8], %s1787_s5 }
  0x57   : > { %s218_s25 = sshll.u32 %s211_s28, 4  ;;  %s2783_s12 = scalar_lea.sflag [#allocation4], %s207_s24  ;;  %s2778_s25 = int_to_ptr.vmem [resolvable:$true] %s218_s25 }
  0x58   : > { %s2781_s11 = scalar_select %p81_p11, %s2585_s17, %s83_s9  }
  0x59   : > { %s2475_s13 = scalar_lea.hbm %s2774_s26, 4096  ;;  %p2937_p1 = scmp.ne.s32.totalorder %s2935_s29, 0 }
  0x5a   : > { %p2476_p13 = scmp.ne.s32.totalorder %s2774_s26, %s2475_s13  ;;  %s2480_s6 = scalar_lea.hbm %s2925_s2, 8192 }
  0x5b   : > { %p2477_p3 = pneg %p2937_p1  ;;  %p2481_p12 = scmp.lt.u32.totalorder %s2774_s26, %s2925_s2 }
  0x5c   : > { %p2482_p2 = scmp.lt.u32.totalorder %s2480_s6, %s2475_s13  ;;  %p2484_p5 = scmp.lt.u32.totalorder %s2475_s13, %s2774_s26 }
  0x5d   : > { %p2478_p7 = pnand %p2477_p3, %p2476_p13 }
  0x5e   : > { %p2483_p4 = por %p2482_p2, %p2481_p12 }
  0x5f   : > { %p2479_p8 = pneg %p2478_p7 }
  0x60   : > { %p2485_p6 = por %p2484_p5, %p2483_p4 }
  0x62   : > { %p2486_p9 = pnand %p2485_p6, %p2479_p8 }
  0x64   : > { %2489 = shalt.err (!%p2486_p9)
}
  0x65   : > { %s2490_s9 = scalar_lea.vmem %s2778_s25, 4096  ;;  %s2606_s24 = smov [#allocation8]  }
  0x66   : > { %p2491_p10 = scmp.ne.s32.totalorder %s2778_s25, %s2490_s9  ;;  %s2495_s14 = sshll.u32 %s2606_s24, 4  ;;  %s2496_s14 = int_to_ptr.vmem [resolvable:$false] %s2495_s14 }
  0x67   : > { %s2497_s28 = scalar_lea.vmem %s2496_s14, 8192  ;;  %p2498_p13 = scmp.lt.s32.totalorder %s2778_s25, %s2496_s14 }
  0x68   : > { %p2493_p0 = pnand %p2491_p10, %p2477_p3  ;;  %p2499_p7 = scmp.lt.s32.totalorder %s2497_s28, %s2490_s9 }
  0x6a   : > { %p2494_p11 = pneg %p2493_p0  ;;  %p2500_p12 = por %p2499_p7, %p2498_p13 }
  0x6c   : > { %p2501_p2 = pnand %p2500_p12, %p2494_p11 }
  0x6e   : > { %2504 = shalt.err (!%p2501_p2)
}
  0x6f   : > { %2057 = dma.hbm_to_vmem [thread:$0]  (!%p2937_p1), %s2774_s26, 4096, %s2778_s25, %s2783_s12, %s2601_s8, %s2601_s8, %s2602_s10  }
  0x70   : > { %p2938_p3 = scmp.ne.s32.totalorder %s2933_s23, 0 }
  0x71   : > { %p2939_p8 = scmp.eq.s32.totalorder (!%p2938_p3), %s2662_s21, 0 }
  0x72   : > { %230 = sbr.rel (%p2938_p3) target bundleno = 1019 (0x3fb), region = 36 }
  0x79   : > { %2556 = dma.done.wait (%p2939_p8), [#allocation4], 512   ;;  %p2940_p4 = pmov %p2939_p8 }
  0x7b   : > { %2558 = vsyncadd (%p2940_p4), [#allocation4], 4294966784  ;;  %p2941_p5 = pmov %p2940_p4 }
  0x7c   : > { %p2942_p6 = pmov %p2940_p4 }
  0x7d   : > { %2560 = dma.done.wait (%p2941_p5), [#allocation7], 16384  }
  0x7e   : > { %2562 = vsyncadd (%p2942_p6), [#allocation7], 4294950912  ;;  %s240_s29 = sand.u32 1, %s2662_s21   ;;  %s242_s8 = sand.u32 1, %s2581_s16  }
  0x7f   : > { %s1793_s10 = sshll.u32 %s242_s8, 8  ;;  %s241_s23 = scalar_lea.sflag [#allocation4], %s240_s29 }
  0x80   : > { %s2826_s26 = scalar_lea.vmem [#allocation8], %s1793_s10  ;;  %p2943_p1 = scmp.ne.s32.totalorder %s2932_s22, 0 }
  0x82   : > { %2564 = dma.done.wait (%p2943_p1), %s241_s23, 4096  }
  0x83   : > { %2566 = vsyncadd (%p2943_p1), %s241_s23, 4294963200  ;;  %p2944_p9 = pmov %p2940_p4 }
  0x84   : > { %p2945_p10 = pmov %p2940_p4 }
  0x85   : > { %2568 = dma.done.wait (%p2944_p9), [#allocation7], 2048  }
  0x86   : > { %2570 = vsyncadd (%p2945_p10), [#allocation7], 4294965248  ;;  %p1795_p0 = scmp.ne.s32.totalorder %s2589_s18, 0 }
  0x87   : > { %v2123_v0 = vld [vmem:[#allocation6 + $0x4] ss:$8 sps:$4 sm:$0xff] (!%p1795_p0)   ;;  %v2127_v2 = vld [vmem:[#allocation6] ss:$8 sps:$4 sm:$0xff] (!%p1795_p0)   ;;  %v2129_v4 = vld [vmem:[#allocation6 + $0x14] ss:$8 sps:$4 sm:$0xff] (!%p1795_p0)  }
  0x88   : > { %272 = sbr.rel (%p1795_p0) target bundleno = 485 (0x1e5), region = 56  ;;  %v2125_v1 = vld [vmem:[#allocation6 + $0x204] ss:$8 sps:$4 sm:$0xff] (!%p1795_p0)   ;;  %1073 = vmatprep.subr.bf16.mxu1 (!%p1795_p0), %v2123_v0  ;;  %v2128_v3 = vld [vmem:[#allocation6 + $0x200] ss:$8 sps:$4 sm:$0xff] (!%p1795_p0)   ;;  %v275_v50 = vld [vmem:[#allocation3 + $0x10] sm:$0xff] (!%p1795_p0) }
  0x89   : > { %1155 = vmatprep.subr.bf16.mxu0 (!%p1795_p0), %v2125_v1  ;;  %1074 = vmatpush1.bf16.msra.mxu1 (!%p1795_p0), %v2127_v2  ;;  %v2131_v5 = vld [vmem:[#allocation6 + $0x214] ss:$8 sps:$4 sm:$0xff] (!%p1795_p0)   ;;  %v2133_v6 = vld [vmem:[#allocation6 + $0x10] ss:$8 sps:$4 sm:$0xff] (!%p1795_p0)   ;;  %v2135_v8 = vld [vmem:[#allocation6 + $0x24] ss:$8 sps:$4 sm:$0xff] (!%p1795_p0)   ;;  %v1801_v53 = vcombine.high (!%p1795_p0), %v275_v50, %v275_v50 }
  0x8a   : > { %1156 = vmatpush1.bf16.msra.mxu0 (!%p1795_p0), %v2128_v3  ;;  %1075 = vmatprep.subr.bf16.mxu1 (!%p1795_p0), %v2129_v4  ;;  %v2134_v7 = vld [vmem:[#allocation6 + $0x210] ss:$8 sps:$4 sm:$0xff] (!%p1795_p0)   ;;  %v2137_v9 = vld [vmem:[#allocation6 + $0x224] ss:$8 sps:$4 sm:$0xff] (!%p1795_p0)   ;;  %v2139_v10 = vld [vmem:[#allocation6 + $0x20] ss:$8 sps:$4 sm:$0xff] (!%p1795_p0)  }
  0x8b   : > { %1157 = vmatprep.subr.bf16.mxu0 (!%p1795_p0), %v2131_v5  ;;  %v2140_v11 = vld [vmem:[#allocation6 + $0x220] ss:$8 sps:$4 sm:$0xff] (!%p1795_p0)   ;;  %v2141_v12 = vld [vmem:[#allocation6 + $0x34] ss:$8 sps:$4 sm:$0xff] (!%p1795_p0)   ;;  %v2145_v14 = vld [vmem:[#allocation6 + $0x30] ss:$8 sps:$4 sm:$0xff] (!%p1795_p0)   ;;  %1187 = vmatprep.mubr.bf16.mxu0 (!%p1795_p0), %v1801_v53 }
  0x8c   : > { %v2143_v13 = vld [vmem:[#allocation6 + $0x234] ss:$8 sps:$4 sm:$0xff] (!%p1795_p0)   ;;  %v2146_v15 = vld [vmem:[#allocation6 + $0x230] ss:$8 sps:$4 sm:$0xff] (!%p1795_p0)   ;;  %v2147_v16 = vld [vmem:[#allocation6 + $0x44] ss:$8 sps:$4 sm:$0xff] (!%p1795_p0)  }
  0x8d   : > { %1076 = vmatpush1.bf16.msra.mxu1 (!%p1795_p0), %v2133_v6  ;;  %v2149_v17 = vld [vmem:[#allocation6 + $0x244] ss:$8 sps:$4 sm:$0xff] (!%p1795_p0)   ;;  %v2151_v18 = vld [vmem:[#allocation6 + $0x40] ss:$8 sps:$4 sm:$0xff] (!%p1795_p0)   ;;  %v2153_v20 = vld [vmem:[#allocation6 + $0x54] ss:$8 sps:$4 sm:$0xff] (!%p1795_p0)  }
  0x8e   : > { %1158 = vmatpush1.bf16.msra.mxu0 (!%p1795_p0), %v2134_v7  ;;  %1077 = vmatprep.subr.bf16.mxu1 (!%p1795_p0), %v2135_v8  ;;  %v2152_v19 = vld [vmem:[#allocation6 + $0x240] ss:$8 sps:$4 sm:$0xff] (!%p1795_p0)   ;;  %v2155_v21 = vld [vmem:[#allocation6 + $0x254] ss:$8 sps:$4 sm:$0xff] (!%p1795_p0)   ;;  %v2157_v22 = vld [vmem:[#allocation6 + $0x50] ss:$8 sps:$4 sm:$0xff] (!%p1795_p0)   ;;  %v1800_v7 = vcombine.low (!%p1795_p0), %v275_v50, %v275_v50 }
  0x8f   : > { %1159 = vmatprep.subr.bf16.mxu0 %v2137_v9  ;;  %v2158_v23 = vld [vmem:[#allocation6 + $0x250] ss:$8 sps:$4 sm:$0xff]   ;;  %v2159_v24 = vld [vmem:[#allocation6 + $0x64] ss:$8 sps:$4 sm:$0xff]   ;;  %v2163_v26 = vld [vmem:[#allocation6 + $0x60] ss:$8 sps:$4 sm:$0xff]  }
  0x90   : > { %v2161_v25 = vld [vmem:[#allocation6 + $0x264] ss:$8 sps:$4 sm:$0xff]   ;;  %v2164_v27 = vld [vmem:[#allocation6 + $0x260] ss:$8 sps:$4 sm:$0xff]   ;;  %v2165_v28 = vld [vmem:[#allocation6 + $0x74] ss:$8 sps:$4 sm:$0xff]  }
  0x91   : > { %1078 = vmatpush1.bf16.msra.mxu1 %v2139_v10  ;;  %v2167_v29 = vld [vmem:[#allocation6 + $0x274] ss:$8 sps:$4 sm:$0xff]   ;;  %v2169_v30 = vld [vmem:[#allocation6 + $0x70] ss:$8 sps:$4 sm:$0xff]   ;;  %v2171_v32 = vld [vmem:[#allocation6 + $0x84] ss:$8 sps:$4 sm:$0xff]  }
  0x92   : > { %1160 = vmatpush1.bf16.msra.mxu0 %v2140_v11  ;;  %1079 = vmatprep.subr.bf16.mxu1 %v2141_v12  ;;  %v2170_v31 = vld [vmem:[#allocation6 + $0x270] ss:$8 sps:$4 sm:$0xff]   ;;  %v2173_v33 = vld [vmem:[#allocation6 + $0x284] ss:$8 sps:$4 sm:$0xff]   ;;  %v2175_v34 = vld [vmem:[#allocation6 + $0x80] ss:$8 sps:$4 sm:$0xff]  }
  0x93   : > { %1161 = vmatprep.subr.bf16.mxu0 %v2143_v13  ;;  %v2176_v35 = vld [vmem:[#allocation6 + $0x280] ss:$8 sps:$4 sm:$0xff]   ;;  %v2177_v36 = vld [vmem:[#allocation6 + $0x94] ss:$8 sps:$4 sm:$0xff]   ;;  %v2181_v38 = vld [vmem:[#allocation6 + $0x90] ss:$8 sps:$4 sm:$0xff]  }
  0x94   : > { %v2179_v37 = vld [vmem:[#allocation6 + $0x294] ss:$8 sps:$4 sm:$0xff]   ;;  %v2182_v39 = vld [vmem:[#allocation6 + $0x290] ss:$8 sps:$4 sm:$0xff]   ;;  %v2183_v40 = vld [vmem:[#allocation6 + $0xa4] ss:$8 sps:$4 sm:$0xff]  }
  0x95   : > { %1080 = vmatpush1.bf16.msra.mxu1 %v2145_v14  ;;  %v2185_v41 = vld [vmem:[#allocation6 + $0x2a4] ss:$8 sps:$4 sm:$0xff]   ;;  %v2187_v42 = vld [vmem:[#allocation6 + $0xa0] ss:$8 sps:$4 sm:$0xff]   ;;  %v2189_v44 = vld [vmem:[#allocation6 + $0xb4] ss:$8 sps:$4 sm:$0xff]  }
  0x96   : > { %1162 = vmatpush1.bf16.msra.mxu0 %v2146_v15  ;;  %1081 = vmatprep.subr.bf16.mxu1 %v2147_v16  ;;  %v2188_v43 = vld [vmem:[#allocation6 + $0x2a0] ss:$8 sps:$4 sm:$0xff]   ;;  %v2191_v45 = vld [vmem:[#allocation6 + $0x2b4] ss:$8 sps:$4 sm:$0xff]   ;;  %v2193_v47 = vld [vmem:[#allocation6 + $0xb0] ss:$8 sps:$4 sm:$0xff]  }
  0x97   : > { %1163 = vmatprep.subr.bf16.mxu0 %v2149_v17  ;;  %v273_v46 = vld [vmem:[#allocation3] sm:$0xff]  ;;  %v2194_v49 = vld [vmem:[#allocation6 + $0x2b0] ss:$8 sps:$4 sm:$0xff]   ;;  %v2201_v56 = vld [vmem:[#allocation6 + $0xd4] ss:$8 sps:$4 sm:$0xff]  }
  0x98   : > { %v1797_v48 = vcombine.high %v273_v46, %v273_v46  ;;  %v2195_v51 = vld [vmem:[#allocation6 + $0xc4] ss:$8 sps:$4 sm:$0xff]   ;;  %v2199_v54 = vld [vmem:[#allocation6 + $0xc0] ss:$8 sps:$4 sm:$0xff]   ;;  %v2203_v57 = vld [vmem:[#allocation6 + $0x2d4] ss:$8 sps:$4 sm:$0xff]   ;;  %v1796_v6 = vcombine.low %v273_v46, %v273_v46 }
  0x99   : > { %1082 = vmatpush1.bf16.msra.mxu1 %v2151_v18  ;;  %v2197_v52 = vld [vmem:[#allocation6 + $0x2c4] ss:$8 sps:$4 sm:$0xff]   ;;  %v2200_v55 = vld [vmem:[#allocation6 + $0x2c0] ss:$8 sps:$4 sm:$0xff]   ;;  %v2205_v58 = vld [vmem:[#allocation6 + $0xd0] ss:$8 sps:$4 sm:$0xff]  }
  0x9a   : > { %1164 = vmatpush1.bf16.msra.mxu0 %v2152_v19  ;;  %1083 = vmatprep.subr.bf16.mxu1 %v2153_v20  ;;  %v2206_v59 = vld [vmem:[#allocation6 + $0x2d0] ss:$8 sps:$4 sm:$0xff]   ;;  %v2207_v60 = vld [vmem:[#allocation6 + $0xe4] ss:$8 sps:$4 sm:$0xff]   ;;  %v2211_v62 = vld [vmem:[#allocation6 + $0xe0] ss:$8 sps:$4 sm:$0xff]  }
  0x9b   : > { %1165 = vmatprep.subr.bf16.mxu0 %v2155_v21  ;;  %1105 = vmatprep.mubr.bf16.mxu1 %v1797_v48  ;;  %v2209_v61 = vld [vmem:[#allocation6 + $0x2e4] ss:$8 sps:$4 sm:$0xff]   ;;  %v2212_v63 = vld [vmem:[#allocation6 + $0x2e0] ss:$8 sps:$4 sm:$0xff]   ;;  %v2213_v0 = vld [vmem:[#allocation6 + $0xf4] ss:$8 sps:$4 sm:$0xff]  }
  0x9c   : > { %v2215_v1 = vld [vmem:[#allocation6 + $0x2f4] ss:$8 sps:$4 sm:$0xff]   ;;  %v2217_v2 = vld [vmem:[#allocation6 + $0xf0] ss:$8 sps:$4 sm:$0xff]   ;;  %v2223_v4 = vld [vmem:[#allocation6 + $0x104] ss:$8 sps:$4 sm:$0xff]  }
  0x9d   : > { %1084 = vmatpush1.bf16.msra.mxu1 %v2157_v22  ;;  %v2218_v3 = vld [vmem:[#allocation6 + $0x2f0] ss:$8 sps:$4 sm:$0xff]   ;;  %v2228_v5 = vld [vmem:[#allocation6 + $0x304] ss:$8 sps:$4 sm:$0xff]   ;;  %v2221_v8 = vld [vmem:[#allocation6 + $0x100] ss:$8 sps:$4 sm:$0xff]  }
  0x9e   : > { %1166 = vmatpush1.bf16.msra.mxu0 %v2158_v23  ;;  %1085 = vmatprep.subr.bf16.mxu1 %v2159_v24  ;;  %v2226_v9 = vld [vmem:[#allocation6 + $0x300] ss:$8 sps:$4 sm:$0xff]   ;;  %v2231_v10 = vld [vmem:[#allocation6 + $0x114] ss:$8 sps:$4 sm:$0xff]   ;;  %v2229_v12 = vld [vmem:[#allocation6 + $0x110] ss:$8 sps:$4 sm:$0xff]  }
  0x9f   : > { %1167 = vmatprep.subr.bf16.mxu0 %v2161_v25  ;;  %v2234_v11 = vld [vmem:[#allocation6 + $0x314] ss:$8 sps:$4 sm:$0xff]   ;;  %v2232_v13 = vld [vmem:[#allocation6 + $0x310] ss:$8 sps:$4 sm:$0xff]   ;;  %v2237_v14 = vld [vmem:[#allocation6 + $0x124] ss:$8 sps:$4 sm:$0xff]  }
  0xa0   : > { %v2240_v15 = vld [vmem:[#allocation6 + $0x324] ss:$8 sps:$4 sm:$0xff]   ;;  %v2235_v16 = vld [vmem:[#allocation6 + $0x120] ss:$8 sps:$4 sm:$0xff]   ;;  %v2243_v18 = vld [vmem:[#allocation6 + $0x134] ss:$8 sps:$4 sm:$0xff]  }
  0xa1   : > { %1086 = vmatpush1.bf16.msra.mxu1 %v2163_v26  ;;  %v2238_v17 = vld [vmem:[#allocation6 + $0x320] ss:$8 sps:$4 sm:$0xff]   ;;  %v2246_v19 = vld [vmem:[#allocation6 + $0x334] ss:$8 sps:$4 sm:$0xff]   ;;  %v2241_v20 = vld [vmem:[#allocation6 + $0x130] ss:$8 sps:$4 sm:$0xff]  }
  0xa2   : > { %1168 = vmatpush1.bf16.msra.mxu0 %v2164_v27  ;;  %1087 = vmatprep.subr.bf16.mxu1 %v2165_v28  ;;  %v2244_v21 = vld [vmem:[#allocation6 + $0x330] ss:$8 sps:$4 sm:$0xff]   ;;  %v2249_v22 = vld [vmem:[#allocation6 + $0x144] ss:$8 sps:$4 sm:$0xff]   ;;  %v2247_v24 = vld [vmem:[#allocation6 + $0x140] ss:$8 sps:$4 sm:$0xff]  }
  0xa3   : > { %1169 = vmatprep.subr.bf16.mxu0 %v2167_v29  ;;  %v2252_v23 = vld [vmem:[#allocation6 + $0x344] ss:$8 sps:$4 sm:$0xff]   ;;  %v2250_v25 = vld [vmem:[#allocation6 + $0x340] ss:$8 sps:$4 sm:$0xff]   ;;  %v2255_v26 = vld [vmem:[#allocation6 + $0x154] ss:$8 sps:$4 sm:$0xff]  }
  0xa4   : > { %v2258_v27 = vld [vmem:[#allocation6 + $0x354] ss:$8 sps:$4 sm:$0xff]   ;;  %v2253_v28 = vld [vmem:[#allocation6 + $0x150] ss:$8 sps:$4 sm:$0xff]   ;;  %v2285_v50 = vld [vmem:[#allocation6 + $0x1a4] ss:$8 sps:$4 sm:$0xff]  }
  0xa5   : > { %1088 = vmatpush1.bf16.msra.mxu1 %v2169_v30  ;;  %v2256_v29 = vld [vmem:[#allocation6 + $0x350] ss:$8 sps:$4 sm:$0xff]   ;;  %v2261_v30 = vld [vmem:[#allocation6 + $0x164] ss:$8 sps:$4 sm:$0xff]   ;;  %v2279_v46 = vld [vmem:[#allocation6 + $0x194] ss:$8 sps:$4 sm:$0xff]  }
  0xa6   : > { %1170 = vmatpush1.bf16.msra.mxu0 %v2170_v31  ;;  %1089 = vmatprep.subr.bf16.mxu1 %v2171_v32  ;;  %v2264_v31 = vld [vmem:[#allocation6 + $0x364] ss:$8 sps:$4 sm:$0xff]   ;;  %v2277_v48 = vld [vmem:[#allocation6 + $0x190] ss:$8 sps:$4 sm:$0xff]   ;;  %v2286_v53 = vld [vmem:[#allocation6 + $0x3a0] ss:$8 sps:$4 sm:$0xff]  }
  0xa7   : > { %1171 = vmatprep.subr.bf16.mxu0 %v2173_v33  ;;  %v2837_v32 = vld [vmem:[#allocation3 + $0x8] sm:$0xff]  ;;  %v2839_v33 = vld [vmem:[#allocation3 + $0x18] sm:$0xff] }
  0xa9   : > { %1090 = vmatpush1.bf16.msra.mxu1 %v2175_v34  ;;  %v1799_v34 = vcombine.high %v2837_v32, %v2837_v32 }
  0xaa   : > { %1172 = vmatpush1.bf16.msra.mxu0 %v2176_v35  ;;  %1091 = vmatprep.subr.bf16.mxu1 %v2177_v36  ;;  %v1803_v35 = vcombine.high %v2839_v33, %v2839_v33  ;;  %v2259_v36 = vld [vmem:[#allocation6 + $0x160] ss:$8 sps:$4 sm:$0xff]  }
  0xab   : > { %1173 = vmatprep.subr.bf16.mxu0 %v2179_v37  ;;  %v2262_v37 = vld [vmem:[#allocation6 + $0x360] ss:$8 sps:$4 sm:$0xff]  }
  0xad   : > { %1092 = vmatpush1.bf16.msra.mxu1 %v2181_v38  ;;  %v2267_v38 = vld [vmem:[#allocation6 + $0x174] ss:$8 sps:$4 sm:$0xff]  }
  0xae   : > { %1174 = vmatpush1.bf16.msra.mxu0 %v2182_v39  ;;  %1093 = vmatprep.subr.bf16.mxu1 %v2183_v40  ;;  %v2270_v39 = vld [vmem:[#allocation6 + $0x374] ss:$8 sps:$4 sm:$0xff]   ;;  %v2265_v40 = vld [vmem:[#allocation6 + $0x170] ss:$8 sps:$4 sm:$0xff]  }
  0xaf   : > { %1175 = vmatprep.subr.bf16.mxu0 %v2185_v41  ;;  %v2268_v41 = vld [vmem:[#allocation6 + $0x370] ss:$8 sps:$4 sm:$0xff]  }
  0xb1   : > { %1094 = vmatpush1.bf16.msra.mxu1 %v2187_v42  ;;  %v2273_v42 = vld [vmem:[#allocation6 + $0x184] ss:$8 sps:$4 sm:$0xff]  }
  0xb2   : > { %1176 = vmatpush1.bf16.msra.mxu0 %v2188_v43  ;;  %1095 = vmatprep.subr.bf16.mxu1 %v2189_v44  ;;  %v2276_v43 = vld [vmem:[#allocation6 + $0x384] ss:$8 sps:$4 sm:$0xff]   ;;  %v2271_v44 = vld [vmem:[#allocation6 + $0x180] ss:$8 sps:$4 sm:$0xff]  }
  0xb3   : > { %1177 = vmatprep.subr.bf16.mxu0 %v2191_v45  ;;  %v2274_v45 = vld [vmem:[#allocation6 + $0x380] ss:$8 sps:$4 sm:$0xff]  }
  0xb5   : > { %1096 = vmatpush1.bf16.msra.mxu1 %v2193_v47  ;;  %v2282_v47 = vld [vmem:[#allocation6 + $0x394] ss:$8 sps:$4 sm:$0xff]  }
  0xb6   : > { %1178 = vmatpush1.bf16.msra.mxu0 %v2194_v49  ;;  %1097 = vmatprep.subr.bf16.mxu1 %v2195_v51  ;;  %v2280_v49 = vld [vmem:[#allocation6 + $0x390] ss:$8 sps:$4 sm:$0xff]   ;;  %v2288_v51 = vld [vmem:[#allocation6 + $0x3a4] ss:$8 sps:$4 sm:$0xff]  }
  0xb7   : > { %1179 = vmatprep.subr.bf16.mxu0 %v2197_v52  ;;  %v2283_v52 = vld [vmem:[#allocation6 + $0x1a0] ss:$8 sps:$4 sm:$0xff]  }
  0xb9   : > { %1098 = vmatpush1.bf16.msra.mxu1 %v2199_v54  ;;  %v2291_v54 = vld [vmem:[#allocation6 + $0x1b4] ss:$8 sps:$4 sm:$0xff]  }
  0xba   : > { %1180 = vmatpush1.bf16.msra.mxu0 %v2200_v55  ;;  %1099 = vmatprep.subr.bf16.mxu1 %v2201_v56  ;;  %v2294_v55 = vld [vmem:[#allocation6 + $0x3b4] ss:$8 sps:$4 sm:$0xff]   ;;  %v2289_v56 = vld [vmem:[#allocation6 + $0x1b0] ss:$8 sps:$4 sm:$0xff]  }
  0xbb   : > { %1181 = vmatprep.subr.bf16.mxu0 %v2203_v57  ;;  %v2292_v57 = vld [vmem:[#allocation6 + $0x3b0] ss:$8 sps:$4 sm:$0xff]  }
  0xbd   : > { %1100 = vmatpush1.bf16.msra.mxu1 %v2205_v58  ;;  %v2297_v58 = vld [vmem:[#allocation6 + $0x1c4] ss:$8 sps:$4 sm:$0xff]  }
  0xbe   : > { %1182 = vmatpush1.bf16.msra.mxu0 %v2206_v59  ;;  %1101 = vmatprep.subr.bf16.mxu1 %v2207_v60  ;;  %v2300_v59 = vld [vmem:[#allocation6 + $0x3c4] ss:$8 sps:$4 sm:$0xff]   ;;  %v2295_v60 = vld [vmem:[#allocation6 + $0x1c0] ss:$8 sps:$4 sm:$0xff]  }
  0xbf   : > { %1183 = vmatprep.subr.bf16.mxu0 %v2209_v61  ;;  %v2298_v61 = vld [vmem:[#allocation6 + $0x3c0] ss:$8 sps:$4 sm:$0xff]  }
  0xc1   : > { %1102 = vmatpush1.bf16.msra.mxu1 %v2211_v62  ;;  %v2303_v62 = vld [vmem:[#allocation6 + $0x1d4] ss:$8 sps:$4 sm:$0xff]  }
  0xc2   : > { %1184 = vmatpush1.bf16.msra.mxu0 %v2212_v63  ;;  %1103 = vmatprep.subr.bf16.mxu1 %v2213_v0  ;;  %v2306_v63 = vld [vmem:[#allocation6 + $0x3d4] ss:$8 sps:$4 sm:$0xff]   ;;  %v2301_v0 = vld [vmem:[#allocation6 + $0x1d0] ss:$8 sps:$4 sm:$0xff]  }
  0xc3   : > { %1185 = vmatprep.subr.bf16.mxu0 %v2215_v1  ;;  %v2304_v1 = vld [vmem:[#allocation6 + $0x3d0] ss:$8 sps:$4 sm:$0xff]  }
  0xc5   : > { %1104 = vmatpush1.bf16.msra.mxu1 %v2217_v2  ;;  %v2309_v2 = vld [vmem:[#allocation6 + $0x1e4] ss:$8 sps:$4 sm:$0xff]  }
  0xc6   : > { %1186 = vmatpush1.bf16.msra.mxu0 %v2218_v3  ;;  %1114 = vmatprep.subr.bf16.mxu1 %v2223_v4  ;;  %v2312_v3 = vld [vmem:[#allocation6 + $0x3e4] ss:$8 sps:$4 sm:$0xff]   ;;  %v2307_v4 = vld [vmem:[#allocation6 + $0x1e0] ss:$8 sps:$4 sm:$0xff]  }
  0xc7   : > { %1196 = vmatprep.subr.bf16.mxu0 %v2228_v5  ;;  %v2310_v5 = vld [vmem:[#allocation6 + $0x3e0] ss:$8 sps:$4 sm:$0xff]  }
  0xc8   : > { %1106 = vmatmul.mubr.bf16.vlgmr.msra.gmra.mrb[0].mxu1 %v1796_v6  ;;  %v2315_v6 = vld [vmem:[#allocation6 + $0x1f4] ss:$8 sps:$4 sm:$0xff]  }
  0xc9   : > { %1188 = vmatmul.mubr.bf16.vlgmr.msra.gmra.mrb[0].mxu0 %v1800_v7  ;;  %1115 = vmatpush1.bf16.msra.mxu1 %v2221_v8  ;;  %v2318_v7 = vld [vmem:[#allocation6 + $0x3f4] ss:$8 sps:$4 sm:$0xff]   ;;  %v2313_v8 = vld [vmem:[#allocation6 + $0x1f0] ss:$8 sps:$4 sm:$0xff]  }
  0xca   : > { %1197 = vmatpush1.bf16.msra.mxu0 %v2226_v9  ;;  %1116 = vmatprep.subr.bf16.mxu1 %v2231_v10  ;;  %v2316_v9 = vld [vmem:[#allocation6 + $0x3f0] ss:$8 sps:$4 sm:$0xff]   ;;  %v1798_v10 = vcombine.low %v2837_v32, %v2837_v32 }
  0xcb   : > { %1198 = vmatprep.subr.bf16.mxu0 %v2234_v11  ;;  %1146 = vmatprep.mubr.bf16.mxu1 %v1799_v34  ;;  %v1802_v11 = vcombine.low %v2839_v33, %v2839_v33 }
  0xcc   : > { %1228 = vmatprep.mubr.bf16.mxu0 %v1803_v35 }
  0xcd   : > { %1117 = vmatpush1.bf16.msra.mxu1 %v2229_v12 }
  0xce   : > { %1199 = vmatpush1.bf16.msra.mxu0 %v2232_v13  ;;  %1118 = vmatprep.subr.bf16.mxu1 %v2237_v14 }
  0xcf   : > { %1200 = vmatprep.subr.bf16.mxu0 %v2240_v15 }
  0xd1   : > { %1119 = vmatpush1.bf16.msra.mxu1 %v2235_v16 }
  0xd2   : > { %1201 = vmatpush1.bf16.msra.mxu0 %v2238_v17  ;;  %1120 = vmatprep.subr.bf16.mxu1 %v2243_v18 }
  0xd3   : > { %1202 = vmatprep.subr.bf16.mxu0 %v2246_v19 }
  0xd5   : > { %1121 = vmatpush1.bf16.msra.mxu1 %v2241_v20 }
  0xd6   : > { %1203 = vmatpush1.bf16.msra.mxu0 %v2244_v21  ;;  %1122 = vmatprep.subr.bf16.mxu1 %v2249_v22 }
  0xd7   : > { %1204 = vmatprep.subr.bf16.mxu0 %v2252_v23 }
  0xd9   : > { %1123 = vmatpush1.bf16.msra.mxu1 %v2247_v24 }
  0xda   : > { %1205 = vmatpush1.bf16.msra.mxu0 %v2250_v25  ;;  %1124 = vmatprep.subr.bf16.mxu1 %v2255_v26 }
  0xdb   : > { %1206 = vmatprep.subr.bf16.mxu0 %v2258_v27 }
  0xdd   : > { %1125 = vmatpush1.bf16.msra.mxu1 %v2253_v28 }
  0xde   : > { %1207 = vmatpush1.bf16.msra.mxu0 %v2256_v29  ;;  %1126 = vmatprep.subr.bf16.mxu1 %v2261_v30 }
  0xdf   : > { %1208 = vmatprep.subr.bf16.mxu0 %v2264_v31 }
  0xe1   : > { %1127 = vmatpush1.bf16.msra.mxu1 %v2259_v36 }
  0xe2   : > { %1209 = vmatpush1.bf16.msra.mxu0 %v2262_v37  ;;  %1128 = vmatprep.subr.bf16.mxu1 %v2267_v38 }
  0xe3   : > { %1210 = vmatprep.subr.bf16.mxu0 %v2270_v39 }
  0xe5   : > { %1129 = vmatpush1.bf16.msra.mxu1 %v2265_v40 }
  0xe6   : > { %1211 = vmatpush1.bf16.msra.mxu0 %v2268_v41  ;;  %1130 = vmatprep.subr.bf16.mxu1 %v2273_v42 }
  0xe7   : > { %1212 = vmatprep.subr.bf16.mxu0 %v2276_v43 }
  0xe9   : > { %1131 = vmatpush1.bf16.msra.mxu1 %v2271_v44 }
  0xea   : > { %1213 = vmatpush1.bf16.msra.mxu0 %v2274_v45  ;;  %1132 = vmatprep.subr.bf16.mxu1 %v2279_v46 }
  0xeb   : > { %1214 = vmatprep.subr.bf16.mxu0 %v2282_v47 }
  0xed   : > { %1133 = vmatpush1.bf16.msra.mxu1 %v2277_v48 }
  0xee   : > { %1215 = vmatpush1.bf16.msra.mxu0 %v2280_v49  ;;  %1134 = vmatprep.subr.bf16.mxu1 %v2285_v50 }
  0xef   : > { %1216 = vmatprep.subr.bf16.mxu0 %v2288_v51 }
  0xf1   : > { %1135 = vmatpush1.bf16.msra.mxu1 %v2283_v52 }
  0xf2   : > { %1217 = vmatpush1.bf16.msra.mxu0 %v2286_v53  ;;  %1136 = vmatprep.subr.bf16.mxu1 %v2291_v54 }
  0xf3   : > { %1218 = vmatprep.subr.bf16.mxu0 %v2294_v55 }
  0xf5   : > { %1137 = vmatpush1.bf16.msra.mxu1 %v2289_v56 }
  0xf6   : > { %1219 = vmatpush1.bf16.msra.mxu0 %v2292_v57  ;;  %1138 = vmatprep.subr.bf16.mxu1 %v2297_v58 }
  0xf7   : > { %1220 = vmatprep.subr.bf16.mxu0 %v2300_v59 }
  0xf9   : > { %1139 = vmatpush1.bf16.msra.mxu1 %v2295_v60 }
  0xfa   : > { %1221 = vmatpush1.bf16.msra.mxu0 %v2298_v61  ;;  %1140 = vmatprep.subr.bf16.mxu1 %v2303_v62 }
  0xfb   : > { %1222 = vmatprep.subr.bf16.mxu0 %v2306_v63 }
  0xfd   : > { %1141 = vmatpush1.bf16.msra.mxu1 %v2301_v0 }
  0xfe   : > { %1223 = vmatpush1.bf16.msra.mxu0 %v2304_v1  ;;  %1142 = vmatprep.subr.bf16.mxu1 %v2309_v2 }
  0xff   : > { %1224 = vmatprep.subr.bf16.mxu0 %v2312_v3 }
 0x101   : > { %1143 = vmatpush1.bf16.msra.mxu1 %v2307_v4 }
 0x102   : > { %1225 = vmatpush1.bf16.msra.mxu0 %v2310_v5  ;;  %1144 = vmatprep.subr.bf16.mxu1 %v2315_v6 }
 0x103   : > { %1226 = vmatprep.subr.bf16.mxu0 %v2318_v7 }
 0x105   : > { %1145 = vmatpush1.bf16.msra.mxu1 %v2313_v8 }
 0x106   : > { %1227 = vmatpush1.bf16.msra.mxu0 %v2316_v9 }
 0x108   : > { %1147 = vmatmul.mubr.bf16.vlgmr.msra.gmra.mrb[0].mxu1 %v1798_v10 }
 0x109   : > { %1229 = vmatmul.mubr.bf16.vlgmr.msra.gmra.mrb[0].mxu0 %v1802_v11 }
 0x1db   : > { %v1148_v12 = vpop.f32.mrb[0].mxu1 }
 0x1dc   : > { %v1230_v13 = vpop.f32.mrb[0].mxu0  ;;  %v1150_v15 = vpop.f32.mrb[1].mxu1 }
 0x1dd   : > { %v2016_v14 = vadd.f32 %v1230_v13, %v1148_v12  ;;  %v1232_v16 = vpop.f32.mrb[1].mxu0  ;;  %v1152_v18 = vpop.f32.mrb[2].mxu1 }
 0x1de   : > { %v2017_v17 = vadd.f32 %v1232_v16, %v1150_v15  ;;  %v1234_v19 = vpop.f32.mrb[2].mxu0  ;;  %v1153_v21 = vpop.f32.mrb[3].mxu1 }
 0x1df   : > { %v1237_v20 = vmax.f32 %v2016_v14, 0.0  ;;  %v1235_v22 = vpop.f32.mrb[3].mxu0 }
 0x1e0   : > { %v1238_v23 = vmax.f32 %v2017_v17, 0.0 }
 0x1e2   : > { %v1992_v24 = vpack.c.bf16 %v1238_v23, %v1237_v20 }
 0x1e4   : > { %1247 = vst [vmem:[#allocation2] sm:$0xff] %v1992_v24 }
 0x1e5 PF: > { %v2323_v25 = vld [vmem:[%s2826_s26 + $0x4] ss:$8 sps:$4 sm:$0xff]   ;;  %v2325_v26 = vld [vmem:[%s2826_s26] ss:$8 sps:$4 sm:$0xff]   ;;  %v2326_v27 = vld [vmem:[%s2826_s26 + $0x14] ss:$8 sps:$4 sm:$0xff]  }
 0x1e6   : > { %1448 = vmatprep.subr.bf16.mxu0 %v2323_v25  ;;  %v2328_v28 = vld [vmem:[%s2826_s26 + $0x10] ss:$8 sps:$4 sm:$0xff]   ;;  %v2329_v29 = vld [vmem:[%s2826_s26 + $0x24] ss:$8 sps:$4 sm:$0xff]   ;;  %v2331_v30 = vld [vmem:[%s2826_s26 + $0x20] ss:$8 sps:$4 sm:$0xff]  }
 0x1e7   : > { %1449 = vmatpush1.bf16.msra.mxu0 %v2325_v26  ;;  %v2332_v31 = vld [vmem:[%s2826_s26 + $0x34] ss:$8 sps:$4 sm:$0xff]   ;;  %v2334_v32 = vld [vmem:[%s2826_s26 + $0x30] ss:$8 sps:$4 sm:$0xff]   ;;  %v2335_v33 = vld [vmem:[%s2826_s26 + $0x44] ss:$8 sps:$4 sm:$0xff]  }
 0x1e8   : > { %1450 = vmatprep.subr.bf16.mxu0 %v2326_v27  ;;  %v2337_v34 = vld [vmem:[%s2826_s26 + $0x40] ss:$8 sps:$4 sm:$0xff]   ;;  %v2338_v35 = vld [vmem:[%s2826_s26 + $0x54] ss:$8 sps:$4 sm:$0xff]   ;;  %v2340_v36 = vld [vmem:[%s2826_s26 + $0x50] ss:$8 sps:$4 sm:$0xff]  }
 0x1e9   : > { %v2341_v37 = vld [vmem:[%s2826_s26 + $0x64] ss:$8 sps:$4 sm:$0xff]   ;;  %v2343_v40 = vld [vmem:[%s2826_s26 + $0x60] ss:$8 sps:$4 sm:$0xff]   ;;  %v2344_v41 = vld [vmem:[%s2826_s26 + $0x74] ss:$8 sps:$4 sm:$0xff]  }
 0x1ea   : > { %v2346_v42 = vld [vmem:[%s2826_s26 + $0x70] ss:$8 sps:$4 sm:$0xff]   ;;  %v2347_v43 = vld [vmem:[%s2826_s26 + $0x84] ss:$8 sps:$4 sm:$0xff]   ;;  %v2349_v44 = vld [vmem:[%s2826_s26 + $0x80] ss:$8 sps:$4 sm:$0xff]  }
 0x1eb   : > { %1451 = vmatpush1.bf16.msra.mxu0 %v2328_v28  ;;  %v1248_v38 = vld [vmem:[#allocation2] sm:$0xff]  ;;  %v2353_v47 = vld [vmem:[%s2826_s26 + $0xa4] ss:$8 sps:$4 sm:$0xff]   ;;  %v2355_v48 = vld [vmem:[%s2826_s26 + $0xa0] ss:$8 sps:$4 sm:$0xff]   ;;  %p1968_p11 = scmp.ne.s32.totalorder %s2589_s18, 1 }
 0x1ec   : > { %1452 = vmatprep.subr.bf16.mxu0 %v2329_v29  ;;  %v1934_v39 = vcombine.high %v1248_v38, %v1248_v38  ;;  %v2350_v45 = vld [vmem:[%s2826_s26 + $0x94] ss:$8 sps:$4 sm:$0xff]   ;;  %v2352_v46 = vld [vmem:[%s2826_s26 + $0x90] ss:$8 sps:$4 sm:$0xff]   ;;  %v2359_v51 = vld [vmem:[%s2826_s26 + $0xc4] ss:$8 sps:$4 sm:$0xff]   ;;  %v1933_v59 = vcombine.low %v1248_v38, %v1248_v38 }
 0x1ed   : > { %v2356_v49 = vld [vmem:[%s2826_s26 + $0xb4] ss:$8 sps:$4 sm:$0xff]   ;;  %v2358_v50 = vld [vmem:[%s2826_s26 + $0xb0] ss:$8 sps:$4 sm:$0xff]   ;;  %v2361_v52 = vld [vmem:[%s2826_s26 + $0xc0] ss:$8 sps:$4 sm:$0xff]  }
 0x1ee   : > { %1480 = vmatprep.mubr.bf16.mxu0 %v1934_v39  ;;  %v2362_v53 = vld [vmem:[%s2826_s26 + $0xd4] ss:$8 sps:$4 sm:$0xff]   ;;  %v2364_v54 = vld [vmem:[%s2826_s26 + $0xd0] ss:$8 sps:$4 sm:$0xff]   ;;  %v2365_v55 = vld [vmem:[%s2826_s26 + $0xe4] ss:$8 sps:$4 sm:$0xff]  }
 0x1ef   : > { %1453 = vmatpush1.bf16.msra.mxu0 %v2331_v30  ;;  %v2367_v56 = vld [vmem:[%s2826_s26 + $0xe0] ss:$8 sps:$4 sm:$0xff]   ;;  %v2368_v57 = vld [vmem:[%s2826_s26 + $0xf4] ss:$8 sps:$4 sm:$0xff]   ;;  %v2370_v58 = vld [vmem:[%s2826_s26 + $0xf0] ss:$8 sps:$4 sm:$0xff]  }
 0x1f0   : > { %1454 = vmatprep.subr.bf16.mxu0 %v2332_v31  ;;  %v2373_v3 = vld [vmem:[#allocation9 + $0x40] sm:$0xff] (!%p1968_p11)   ;;  %v2375_v5 = vld [vmem:[#allocation9 + $0x48] sm:$0xff] (!%p1968_p11)   ;;  %v2377_v7 = vld [vmem:[#allocation9 + $0x50] sm:$0xff] (!%p1968_p11)  }
 0x1f1   : > { %v2374_v4 = vld [vmem:[#allocation9] sm:$0xff] (!%p1968_p11)   ;;  %v2376_v6 = vld [vmem:[#allocation9 + $0x8] sm:$0xff] (!%p1968_p11)   ;;  %v2378_v8 = vld [vmem:[#allocation9 + $0x10] sm:$0xff] (!%p1968_p11)  }
 0x1f2   : > { %v2379_v9 = vld [vmem:[#allocation9 + $0x58] sm:$0xff] (!%p1968_p11)   ;;  %v2381_v11 = vld [vmem:[#allocation9 + $0x60] sm:$0xff] (!%p1968_p11)   ;;  %v2383_v13 = vld [vmem:[#allocation9 + $0x68] sm:$0xff] (!%p1968_p11)  }
 0x1f3   : > { %1455 = vmatpush1.bf16.msra.mxu0 %v2334_v32  ;;  %v2380_v10 = vld [vmem:[#allocation9 + $0x18] sm:$0xff] (!%p1968_p11)   ;;  %v2382_v12 = vld [vmem:[#allocation9 + $0x20] sm:$0xff] (!%p1968_p11)   ;;  %v2384_v16 = vld [vmem:[#allocation9 + $0x28] sm:$0xff] (!%p1968_p11)  }
 0x1f4   : > { %1456 = vmatprep.subr.bf16.mxu0 %v2335_v33  ;;  %v2385_v17 = vld [vmem:[#allocation9 + $0x70] sm:$0xff] (!%p1968_p11)   ;;  %v2387_v19 = vld [vmem:[#allocation9 + $0x78] sm:$0xff] (!%p1968_p11)  }
 0x1f5   : > { %v2386_v18 = vld [vmem:[#allocation9 + $0x30] sm:$0xff] (!%p1968_p11)   ;;  %v2388_v20 = vld [vmem:[#allocation9 + $0x38] sm:$0xff] (!%p1968_p11)  }
 0x1f7   : > { %1457 = vmatpush1.bf16.msra.mxu0 %v2337_v34 }
 0x1f8   : > { %1458 = vmatprep.subr.bf16.mxu0 %v2338_v35 }
 0x1fb   : > { %1459 = vmatpush1.bf16.msra.mxu0 %v2340_v36 }
 0x1fc   : > { %1460 = vmatprep.subr.bf16.mxu0 %v2341_v37 }
 0x1ff   : > { %1461 = vmatpush1.bf16.msra.mxu0 %v2343_v40 }
 0x200   : > { %1462 = vmatprep.subr.bf16.mxu0 %v2344_v41 }
 0x203   : > { %1463 = vmatpush1.bf16.msra.mxu0 %v2346_v42 }
 0x204   : > { %1464 = vmatprep.subr.bf16.mxu0 %v2347_v43 }
 0x207   : > { %1465 = vmatpush1.bf16.msra.mxu0 %v2349_v44 }
 0x208   : > { %1466 = vmatprep.subr.bf16.mxu0 %v2350_v45 }
 0x20b   : > { %1467 = vmatpush1.bf16.msra.mxu0 %v2352_v46 }
 0x20c   : > { %1468 = vmatprep.subr.bf16.mxu0 %v2353_v47 }
 0x20f   : > { %1469 = vmatpush1.bf16.msra.mxu0 %v2355_v48 }
 0x210   : > { %1470 = vmatprep.subr.bf16.mxu0 %v2356_v49 }
 0x213   : > { %1471 = vmatpush1.bf16.msra.mxu0 %v2358_v50 }
 0x214   : > { %1472 = vmatprep.subr.bf16.mxu0 %v2359_v51 }
 0x217   : > { %1473 = vmatpush1.bf16.msra.mxu0 %v2361_v52 }
 0x218   : > { %1474 = vmatprep.subr.bf16.mxu0 %v2362_v53 }
 0x21b   : > { %1475 = vmatpush1.bf16.msra.mxu0 %v2364_v54 }
 0x21c   : > { %1476 = vmatprep.subr.bf16.mxu0 %v2365_v55 }
 0x21f   : > { %1477 = vmatpush1.bf16.msra.mxu0 %v2367_v56 }
 0x220   : > { %1478 = vmatprep.subr.bf16.mxu0 %v2368_v57 }
 0x223   : > { %1479 = vmatpush1.bf16.msra.mxu0 %v2370_v58 }
 0x224   : > { %1994 = vmatprep.subr.bf16.mxu0 (!%p1968_p11), %v2373_v3 }
 0x226   : > { %1481 = vmatmul.mubr.bf16.vlgmr.msra.gmra.mrb[0].mxu0 %v1933_v59 }
 0x227   : > { %1995 = vmatpush3.bf16.msra.mxu0 (!%p1968_p11), %v2374_v4 }
 0x228   : > { %1996 = vmatprep.subr.bf16.mxu0 (!%p1968_p11), %v2375_v5 }
 0x22b   : > { %1997 = vmatpush3.bf16.msra.mxu0 (!%p1968_p11), %v2376_v6 }
 0x22c   : > { %1998 = vmatprep.subr.bf16.mxu0 (!%p1968_p11), %v2377_v7 }
 0x22f   : > { %1999 = vmatpush3.bf16.msra.mxu0 (!%p1968_p11), %v2378_v8 }
 0x230   : > { %2000 = vmatprep.subr.bf16.mxu0 (!%p1968_p11), %v2379_v9 }
 0x233   : > { %2001 = vmatpush3.bf16.msra.mxu0 (!%p1968_p11), %v2380_v10 }
 0x234   : > { %2002 = vmatprep.subr.bf16.mxu0 (!%p1968_p11), %v2381_v11 }
 0x237   : > { %2003 = vmatpush3.bf16.msra.mxu0 (!%p1968_p11), %v2382_v12 }
 0x238   : > { %2004 = vmatprep.subr.bf16.mxu0 (!%p1968_p11), %v2383_v13 }
 0x23b   : > { %2005 = vmatpush3.bf16.msra.mxu0 (!%p1968_p11), %v2384_v16 }
 0x23c   : > { %2006 = vmatprep.subr.bf16.mxu0 (!%p1968_p11), %v2385_v17 }
 0x23f   : > { %2007 = vmatpush3.bf16.msra.mxu0 (!%p1968_p11), %v2386_v18 }
 0x240   : > { %2008 = vmatprep.subr.bf16.mxu0 (!%p1968_p11), %v2387_v19 }
 0x243   : > { %2009 = vmatpush3.bf16.msra.mxu0 (!%p1968_p11), %v2388_v20 }
 0x2f9   : > { %v1482_v60 = vpop.f32.mrb[0].mxu0  ;;  %1503 = sbr.rel (%p1968_p11) target bundleno = 994 (0x3e2), region = 60 }
 0x2fa   : > { %v1489_v61 = vmax.f32 %v1482_v60, 0.0  ;;  %v1484_v62 = vpop.f32.mrb[1].mxu0 }
 0x2fb   : > { %v1490_v63 = vmax.f32 %v1484_v62, 0.0  ;;  %v1486_v0 = vpop.f32.mrb[2].mxu0 }
 0x2fc   : > { %v1487_v1 = vpop.f32.mrb[3].mxu0 }
 0x2fd   : > { %v1993_v2 = vpack.c.bf16 %v1490_v63, %v1489_v61 }
 0x2ff   : > { %1499 = vst [vmem:[#allocation2] sm:$0xff] %v1993_v2 }
 0x306   : > { %v1504_v14 = vld [vmem:[#allocation2] sm:$0xff] }
 0x307   : > { %v1970_v15 = vcombine.high %v1504_v14, %v1504_v14  ;;  %v1969_v21 = vcombine.low %v1504_v14, %v1504_v14 }
 0x309   : > { %1672 = vmatprep.mubr.bf16.mxu0 %v1970_v15 }
 0x30a   : > { %1673 = vmatmul.mubr.bf16.vlgmr.msra.gmra.mrb[0].mxu0 %v1969_v21 }
 0x3dd   : > { %v2010_v22 = vpop.f32.mrb[0].mxu0 }
 0x3de   : > { %v2011_v23 = vpop.f32.mrb[1].mxu0 }
 0x3df   : > { %v2012_v24 = vadd.f32 %v2011_v23, %v2010_v22  ;;  %v2013_v25 = vpop.f32.mrb[2].mxu0 }
 0x3e0   : > { %v2014_v26 = vpop.f32.mrb[3].mxu0 }
 0x3e1   : > { %1680 = vst [vmem:[#allocation10] sm:$0xff] %v2012_v24 }
 0x3e2 PF: > { %p2065_p13 = scmp.eq.s32.totalorder %s2662_s21, 1  ;;  %s2607_s18 = smov [#allocation10]  }
 0x3e3   : > { %s1690_s22 = sshll.u32 %s2607_s18, 4  ;;  %s1691_s22 = int_to_ptr.vmem [resolvable:$true] %s1690_s22 }
 0x3e4   : > { %s2505_s25 = scalar_lea.vmem %s1691_s22, 128  ;;  %p2512_p3 = scmp.lt.s32.totalorder %s1691_s22, %s1691_s22 }
 0x3e5   : > { %p2506_p7 = scmp.ne.s32.totalorder %s1691_s22, %s2505_s25  ;;  %p2513_p8 = scmp.lt.s32.totalorder %s2505_s25, %s2505_s25 }
 0x3e7   : > { %p2507_p12 = pnand %p2506_p7, %p2065_p13  ;;  %p2514_p4 = por %p2513_p8, %p2512_p3 }
 0x3e9   : > { %p2508_p2 = pneg %p2507_p12 }
 0x3eb   : > { %p2515_p5 = pnand %p2514_p4, %p2508_p2 }
 0x3ed   : > { %2518 = shalt.err (!%p2515_p5)
}
 0x3ee   : > { %s2519_s27 = scalar_lea.hbm %s2927_s4, 128 }
 0x3ef   : > { %p2520_p6 = scmp.ne.s32.totalorder %s2927_s4, %s2519_s27  ;;  %p2525_p10 = scmp.lt.u32.totalorder %s2519_s27, %s2927_s4 }
 0x3f1   : > { %p2521_p1 = pnand %p2520_p6, %p2065_p13 }
 0x3f3   : > { %p2522_p9 = pneg %p2521_p1 }
 0x3f5   : > { %p2527_p0 = pnand %p2525_p10, %p2522_p9 }
 0x3f7   : > { %2530 = shalt.err (!%p2527_p0)
}
 0x3f8   : > { %2041 = dma.vmem_to_hbm [thread:$0]  (%p2065_p13), %s1691_s22, 128, %s2927_s4, [#allocation5]  }
 0x3f9   : > { %2572 = dma.done.wait (%p2065_p13), [#allocation5], 128  }
 0x3fa   : > { %2574 = vsyncadd (%p2065_p13), [#allocation5], 4294967168 }
 0x3fb PF: > { %s17_s20 = sadd.s32 1, %s2597_s20   ;;  %s2946_s14 = smov %s2953_s15 }
 0x3fc   : > { %p14_p11 = scmp.ge.s32.totalorder %s17_s20, 4   ;;  %s2947_s15 = smov %s2581_s16 }
 0x3fd   : > { %s2948_s16 = smov %s2585_s17  ;;  %s2949_s17 = smov %s2781_s11 }
 0x3fe   : > { %s2950_s18 = smov %s2593_s19  ;;  %s2951_s19 = smov %s2946_s14 }
 0x3ff   :  { %16 = sbr.rel (!%p14_p11) target bundleno = 5 (0x5), region = 94 }
 0x406   :  { %1703 = vsyncpa [#allocation4], 1 }
 0x407   :  { %1705 = vsyncpa [#allocation4 + $0x1], 1 }
 0x408   :  { %1706 = vsyncpa [#allocation7], 1 }
 0x409   :  { %1707 = vsyncpa [#allocation5], 1 }
 0x40a   :  { %1709 = vsyncpa [#allocation5 + $0x1], 1 }

</bundles_post_ra>
